<compile_context>
chip_gen: v5e
topology: v5e:2x2
jax: 0.10.0
libtpu: 0.0.40
codegen_flags: <defaults>
</compile_context>

<pallas_src>
import jax
import jax.numpy as jnp
from jax.experimental import pallas as pl
from jax.experimental.pallas import tpu as pltpu

IN_FEATURES = 28 * 28       # 784
HIDDEN = 100
NUM_CLASSES = 100           # EPOCHS in the reference script

# Lane-aligned padded sizes.
IN_PAD = 896                # 7 * 128
HID_PAD = 128
OUT_PAD = 128


def _mlp_kernel(x_ref,
                w1_ref, b1_ref,
                w2_ref, b2_ref,
                w3_ref, b3_ref,
                wc_ref, bc_ref,
                o_ref):
    # Eval-mode forward: dropout == identity, use_batchnorm == False.
    # bf16 operands on the MXU, f32 accumulation, f32 bias add + ReLU on VPU.
    h = jnp.dot(x_ref[...], w1_ref[...], preferred_element_type=jnp.float32)
    h = jnp.maximum(h + b1_ref[...], 0.0).astype(jnp.bfloat16)

    h = jnp.dot(h, w2_ref[...], preferred_element_type=jnp.float32)
    h = jnp.maximum(h + b2_ref[...], 0.0).astype(jnp.bfloat16)

    h = jnp.dot(h, w3_ref[...], preferred_element_type=jnp.float32)
    h = jnp.maximum(h + b3_ref[...], 0.0).astype(jnp.bfloat16)

    out = jnp.dot(h, wc_ref[...], preferred_element_type=jnp.float32)
    o_ref[...] = (out + bc_ref[...]).astype(o_ref.dtype)
    # TODO(synk): training-mode dropout (p=0.5) would use pltpu.prng_seed +
    # pltpu.stateful_bernoulli; eval-mode forward (identity) is implemented here.


def _pad2d(a, rows, cols):
    return jnp.pad(a, ((0, rows - a.shape[0]), (0, cols - a.shape[1])))


def simple_nn_forward(x, params):
    """x: (B, 784) float32; params: dict from init_params. Returns (B, 100) f32."""
    B = x.shape[0]

    # Zero-pad weights to lane-aligned shapes; cast matmul operands to bf16.
    # (Zero rows/cols guarantee the padded lanes stay exactly zero through
    #  every layer, so slicing the output back to 100 is exact.)
    w1 = _pad2d(params["w1"], IN_PAD, HID_PAD).astype(jnp.bfloat16)
    w2 = _pad2d(params["w2"], HID_PAD, HID_PAD).astype(jnp.bfloat16)
    w3 = _pad2d(params["w3"], HID_PAD, HID_PAD).astype(jnp.bfloat16)
    wc = _pad2d(params["wc"], HID_PAD, OUT_PAD).astype(jnp.bfloat16)
    b1 = _pad2d(params["b1"], 1, HID_PAD)     # biases stay f32 (added post-accum)
    b2 = _pad2d(params["b2"], 1, HID_PAD)
    b3 = _pad2d(params["b3"], 1, HID_PAD)
    bc = _pad2d(params["bc"], 1, OUT_PAD)

    # Batch tiling: rows per grid step multiple of 8 (sublane), capped at 256.
    tile_b = min(256, ((B + 7) // 8) * 8)
    b_pad = ((B + tile_b - 1) // tile_b) * tile_b
    x_p = jnp.pad(x, ((0, b_pad - B), (0, IN_PAD - IN_FEATURES))).astype(jnp.bfloat16)

    grid = (b_pad // tile_b,)

    def const(shape):
        # Full-array block, constant index -> stays VMEM-resident across grid steps.
        return pl.BlockSpec(shape, lambda i: (0,) * len(shape))

    flops = 2 * b_pad * (IN_PAD * HID_PAD + 2 * HID_PAD * HID_PAD + HID_PAD * OUT_PAD)
    bytes_accessed = (
        x_p.size * 2
        + (w1.size + w2.size + w3.size + wc.size) * 2
        + (b1.size + b2.size + b3.size + bc.size) * 4
        + b_pad * OUT_PAD * 4
    )

    out = pl.pallas_call(
        _mlp_kernel,
        out_shape=jax.ShapeDtypeStruct((b_pad, OUT_PAD), jnp.float32),
        grid=grid,
        in_specs=[
            pl.BlockSpec((tile_b, IN_PAD), lambda i: (i, 0)),
            const(w1.shape), const(b1.shape),
            const(w2.shape), const(b2.shape),
            const(w3.shape), const(b3.shape),
            const(wc.shape), const(bc.shape),
        ],
        out_specs=pl.BlockSpec((tile_b, OUT_PAD), lambda i: (i, 0)),
        compiler_params=pltpu.CompilerParams(
            dimension_semantics=("parallel",)),
        cost_estimate=pl.CostEstimate(
            flops=flops, transcendentals=0, bytes_accessed=bytes_accessed),
    )(x_p, w1, b1, w2, b2, w3, b3, wc, bc)

    return out[:B, :NUM_CLASSES]


def init_params(key):
    """Deterministic init mimicking PyTorch nn.Linear default (U(-k, k), k=1/sqrt(fan_in))."""
    def linear(key, fan_in, fan_out):
        k = 1.0 / jnp.sqrt(jnp.float32(fan_in))
        kw, kb = jax.random.split(key)
        # stored as (in, out) so kernel does x @ W
        w = jax.random.uniform(kw, (fan_in, fan_out), jnp.float32, -k, k)
        b = jax.random.uniform(kb, (1, fan_out), jnp.float32, -k, k)
        return w, b

    k1, k2, k3, k4 = jax.random.split(key, 4)
    w1, b1 = linear(k1, IN_FEATURES, HIDDEN)
    w2, b2 = linear(k2, HIDDEN, HIDDEN)
    w3, b3 = linear(k3, HIDDEN, HIDDEN)
    wc, bc = linear(k4, HIDDEN, NUM_CLASSES)
    return dict(w1=w1, b1=b1, w2=w2, b2=b2, w3=w3, b3=b3, wc=wc, bc=bc)


def reference_forward(x, p):
    """Pure f32 reference matching the PyTorch eval-mode forward."""
    h = jnp.maximum(x @ p["w1"] + p["b1"], 0.0)
    h = jnp.maximum(h @ p["w2"] + p["b2"], 0.0)
    h = jnp.maximum(h @ p["w3"] + p["b3"], 0.0)
    return h @ p["wc"] + p["bc"]


if __name__ == "__main__":
    key = jax.random.PRNGKey(0)
    kx, kp = jax.random.split(key)

    B = 8  # small batch for the smoke test
    x = jax.random.normal(kx, (B, IN_FEATURES), dtype=jnp.float32)
    params = init_params(kp)

    out = simple_nn_forward(x, params)
    out = jax.block_until_ready(out)

    ref = reference_forward(x, params)
    assert out.shape == (B, NUM_CLASSES), out.shape
    # bf16 operands with f32 accumulation: relaxed tolerance vs. pure-f32 reference.
    assert jnp.allclose(out, ref, atol=5e-2, rtol=5e-2), (
        "mismatch vs reference; max abs diff = "
        f"{float(jnp.max(jnp.abs(out - ref)))}")

    print("KERNEL_OK")
</pallas_src>

<mosaic_0001>
module attributes {stable_mosaic.version = 11 : i64} {
  func.func @_mlp_kernel(%arg0: i32, %arg1: memref<8x896xbf16, #tpu.memory_space<vmem>>, %arg2: memref<896x128xbf16, #tpu.memory_space<vmem>>, %arg3: memref<1x128xf32, #tpu.memory_space<vmem>>, %arg4: memref<128x128xbf16, #tpu.memory_space<vmem>>, %arg5: memref<1x128xf32, #tpu.memory_space<vmem>>, %arg6: memref<128x128xbf16, #tpu.memory_space<vmem>>, %arg7: memref<1x128xf32, #tpu.memory_space<vmem>>, %arg8: memref<128x128xbf16, #tpu.memory_space<vmem>>, %arg9: memref<1x128xf32, #tpu.memory_space<vmem>>, %arg10: memref<8x128xf32, #tpu.memory_space<vmem>>) attributes {dimension_semantics = [#tpu.dimension_semantics<parallel>], iteration_bounds = array<i64: 1>, scalar_prefetch = 0 : i64, scratch_operands = 0 : i64, tpu.core_type = #tpu.core_type<tc>, window_params = [{transform_indices = @transform_0, window_bounds = array<i64: 8, 896>}, {pipeline_mode = #tpu.pipeline_mode<synchronous>, transform_indices = @transform_1, window_bounds = array<i64: 896, 128>}, {pipeline_mode = #tpu.pipeline_mode<synchronous>, transform_indices = @transform_2, window_bounds = array<i64: 1, 128>}, {pipeline_mode = #tpu.pipeline_mode<synchronous>, transform_indices = @transform_3, window_bounds = array<i64: 128, 128>}, {pipeline_mode = #tpu.pipeline_mode<synchronous>, transform_indices = @transform_4, window_bounds = array<i64: 1, 128>}, {pipeline_mode = #tpu.pipeline_mode<synchronous>, transform_indices = @transform_5, window_bounds = array<i64: 128, 128>}, {pipeline_mode = #tpu.pipeline_mode<synchronous>, transform_indices = @transform_6, window_bounds = array<i64: 1, 128>}, {pipeline_mode = #tpu.pipeline_mode<synchronous>, transform_indices = @transform_7, window_bounds = array<i64: 128, 128>}, {pipeline_mode = #tpu.pipeline_mode<synchronous>, transform_indices = @transform_8, window_bounds = array<i64: 1, 128>}, {transform_indices = @transform_9, window_bounds = array<i64: 8, 128>}]} {
    %c0 = arith.constant 0 : index
    %c0_0 = arith.constant 0 : index
    %0 = vector.load %arg1[%c0, %c0_0] : memref<8x896xbf16, #tpu.memory_space<vmem>>, vector<8x896xbf16>
    %c0_1 = arith.constant 0 : index
    %c0_2 = arith.constant 0 : index
    %1 = vector.load %arg2[%c0_1, %c0_2] : memref<896x128xbf16, #tpu.memory_space<vmem>>, vector<896x128xbf16>
    %cst = arith.constant dense<0.000000e+00> : vector<8x128xf32>
    %2 = tpu.matmul %0, %1, %cst {dimension_numbers = #tpu.dot_dimension_numbers<[1], [0], [0], [1], [0, 0, 1, 1], [], []>} : vector<8x896xbf16>, vector<896x128xbf16>, vector<8x128xf32> -> vector<8x128xf32>
    %c0_3 = arith.constant 0 : index
    %c0_4 = arith.constant 0 : index
    %3 = vector.load %arg3[%c0_3, %c0_4] : memref<1x128xf32, #tpu.memory_space<vmem>>, vector<1x128xf32>
    %4 = vector.broadcast %3 : vector<1x128xf32> to vector<8x128xf32>
    %5 = arith.addf %2, %4 : vector<8x128xf32>
    %cst_5 = arith.constant 0.000000e+00 : f32
    %6 = vector.broadcast %cst_5 : f32 to vector<8x128xf32>
    %7 = arith.maximumf %5, %6 : vector<8x128xf32>
    %8 = arith.truncf %7 : vector<8x128xf32> to vector<8x128xbf16>
    %c0_6 = arith.constant 0 : index
    %c0_7 = arith.constant 0 : index
    %9 = vector.load %arg4[%c0_6, %c0_7] : memref<128x128xbf16, #tpu.memory_space<vmem>>, vector<128x128xbf16>
    %cst_8 = arith.constant dense<0.000000e+00> : vector<8x128xf32>
    %10 = tpu.matmul %8, %9, %cst_8 {dimension_numbers = #tpu.dot_dimension_numbers<[1], [0], [0], [1], [0, 0, 1, 1], [], []>} : vector<8x128xbf16>, vector<128x128xbf16>, vector<8x128xf32> -> vector<8x128xf32>
    %c0_9 = arith.constant 0 : index
    %c0_10 = arith.constant 0 : index
    %11 = vector.load %arg5[%c0_9, %c0_10] : memref<1x128xf32, #tpu.memory_space<vmem>>, vector<1x128xf32>
    %12 = vector.broadcast %11 : vector<1x128xf32> to vector<8x128xf32>
    %13 = arith.addf %10, %12 : vector<8x128xf32>
    %cst_11 = arith.constant 0.000000e+00 : f32
    %14 = vector.broadcast %cst_11 : f32 to vector<8x128xf32>
    %15 = arith.maximumf %13, %14 : vector<8x128xf32>
    %16 = arith.truncf %15 : vector<8x128xf32> to vector<8x128xbf16>
    %c0_12 = arith.constant 0 : index
    %c0_13 = arith.constant 0 : index
    %17 = vector.load %arg6[%c0_12, %c0_13] : memref<128x128xbf16, #tpu.memory_space<vmem>>, vector<128x128xbf16>
    %cst_14 = arith.constant dense<0.000000e+00> : vector<8x128xf32>
    %18 = tpu.matmul %16, %17, %cst_14 {dimension_numbers = #tpu.dot_dimension_numbers<[1], [0], [0], [1], [0, 0, 1, 1], [], []>} : vector<8x128xbf16>, vector<128x128xbf16>, vector<8x128xf32> -> vector<8x128xf32>
    %c0_15 = arith.constant 0 : index
    %c0_16 = arith.constant 0 : index
    %19 = vector.load %arg7[%c0_15, %c0_16] : memref<1x128xf32, #tpu.memory_space<vmem>>, vector<1x128xf32>
    %20 = vector.broadcast %19 : vector<1x128xf32> to vector<8x128xf32>
    %21 = arith.addf %18, %20 : vector<8x128xf32>
    %cst_17 = arith.constant 0.000000e+00 : f32
    %22 = vector.broadcast %cst_17 : f32 to vector<8x128xf32>
    %23 = arith.maximumf %21, %22 : vector<8x128xf32>
    %24 = arith.truncf %23 : vector<8x128xf32> to vector<8x128xbf16>
    %c0_18 = arith.constant 0 : index
    %c0_19 = arith.constant 0 : index
    %25 = vector.load %arg8[%c0_18, %c0_19] : memref<128x128xbf16, #tpu.memory_space<vmem>>, vector<128x128xbf16>
    %cst_20 = arith.constant dense<0.000000e+00> : vector<8x128xf32>
    %26 = tpu.matmul %24, %25, %cst_20 {dimension_numbers = #tpu.dot_dimension_numbers<[1], [0], [0], [1], [0, 0, 1, 1], [], []>} : vector<8x128xbf16>, vector<128x128xbf16>, vector<8x128xf32> -> vector<8x128xf32>
    %c0_21 = arith.constant 0 : index
    %c0_22 = arith.constant 0 : index
    %27 = vector.load %arg9[%c0_21, %c0_22] : memref<1x128xf32, #tpu.memory_space<vmem>>, vector<1x128xf32>
    %28 = vector.broadcast %27 : vector<1x128xf32> to vector<8x128xf32>
    %29 = arith.addf %26, %28 : vector<8x128xf32>
    %c0_23 = arith.constant 0 : index
    %c0_24 = arith.constant 0 : index
    %30 = vector.load %arg10[%c0_23, %c0_24] : memref<8x128xf32, #tpu.memory_space<vmem>>, vector<8x128xf32>
    tpu.vector_store %arg10[%c0_23, %c0_24], %29 {strides = array<i32>} : memref<8x128xf32, #tpu.memory_space<vmem>>, vector<8x128xf32>,
    return
  }
  func.func @transform_0(%arg0: i32) -> (i32, i32) {
    %c0_i32 = arith.constant 0 : i32
    %c0_i32_0 = arith.constant 0 : i32
    return %arg0, %c0_i32 : i32, i32
  }
  func.func @transform_1(%arg0: i32) -> (i32, i32) {
    %c0_i32 = arith.constant 0 : i32
    %c0_i32_0 = arith.constant 0 : i32
    %c0_i32_1 = arith.constant 0 : i32
    return %c0_i32, %c0_i32_0 : i32, i32
  }
  func.func @transform_2(%arg0: i32) -> (i32, i32) {
    %c0_i32 = arith.constant 0 : i32
    %c0_i32_0 = arith.constant 0 : i32
    %c0_i32_1 = arith.constant 0 : i32
    return %c0_i32, %c0_i32_0 : i32, i32
  }
  func.func @transform_3(%arg0: i32) -> (i32, i32) {
    %c0_i32 = arith.constant 0 : i32
    %c0_i32_0 = arith.constant 0 : i32
    %c0_i32_1 = arith.constant 0 : i32
    return %c0_i32, %c0_i32_0 : i32, i32
  }
  func.func @transform_4(%arg0: i32) -> (i32, i32) {
    %c0_i32 = arith.constant 0 : i32
    %c0_i32_0 = arith.constant 0 : i32
    %c0_i32_1 = arith.constant 0 : i32
    return %c0_i32, %c0_i32_0 : i32, i32
  }
  func.func @transform_5(%arg0: i32) -> (i32, i32) {
    %c0_i32 = arith.constant 0 : i32
    %c0_i32_0 = arith.constant 0 : i32
    %c0_i32_1 = arith.constant 0 : i32
    return %c0_i32, %c0_i32_0 : i32, i32
  }
  func.func @transform_6(%arg0: i32) -> (i32, i32) {
    %c0_i32 = arith.constant 0 : i32
    %c0_i32_0 = arith.constant 0 : i32
    %c0_i32_1 = arith.constant 0 : i32
    return %c0_i32, %c0_i32_0 : i32, i32
  }
  func.func @transform_7(%arg0: i32) -> (i32, i32) {
    %c0_i32 = arith.constant 0 : i32
    %c0_i32_0 = arith.constant 0 : i32
    %c0_i32_1 = arith.constant 0 : i32
    return %c0_i32, %c0_i32_0 : i32, i32
  }
  func.func @transform_8(%arg0: i32) -> (i32, i32) {
    %c0_i32 = arith.constant 0 : i32
    %c0_i32_0 = arith.constant 0 : i32
    %c0_i32_1 = arith.constant 0 : i32
    return %c0_i32, %c0_i32_0 : i32, i32
  }
  func.func @transform_9(%arg0: i32) -> (i32, i32) {
    %c0_i32 = arith.constant 0 : i32
    %c0_i32_0 = arith.constant 0 : i32
    return %arg0, %c0_i32 : i32, i32
  }
}

</mosaic_0001>

<bundles_post_ra>
// kernel: tpu_custom_call.1
= control target key start
LH: loop header
LB: loop body
LE: loop exit
PB: predicated region body
PF: predicated region fallthrough
CT: control target
= control target key end

     0   :  { %14 = vsyncpa [#allocation3], 0  ;;  %s1602_s0 = inlined_call_operand.hbm [shape: bf16[8,896], index: 0, kind: input, shape index: {}]   ;;  %s1603_s1 = inlined_call_operand.hbm [shape: bf16[896,128], index: 1, kind: input, shape index: {}]   ;;  %s1604_s2 = inlined_call_operand.vmem [shape: f32[1,128], index: 2, kind: input, shape index: {}]   ;;  %s1605_s3 = inlined_call_operand.hbm [shape: bf16[128,128], index: 3, kind: input, shape index: {}]   ;;  %s1606_s4 = inlined_call_operand.vmem [shape: f32[1,128], index: 4, kind: input, shape index: {}]   ;;  %s1607_s5 = inlined_call_operand.hbm [shape: bf16[128,128], index: 5, kind: input, shape index: {}]   ;;  %s1608_s6 = inlined_call_operand.vmem [shape: f32[1,128], index: 6, kind: input, shape index: {}]   ;;  %s1609_s7 = inlined_call_operand.hbm [shape: bf16[128,128], index: 7, kind: input, shape index: {}]   ;;  %s1610_s8 = inlined_call_operand.vmem [shape: f32[1,128], index: 8, kind: input, shape index: {}]   ;;  %s1611_s9 = inlined_call_operand.hbm [shape: f32[8,128], index: 9, kind: output, shape index: {}]  }
   0x1   :  { %15 = vsyncpa [#allocation6], 0 }
   0x2   :  { %16 = vsyncpa [#allocation9], 0  ;;  %s33_s11 = sshll.u32 %s1603_s1, 4  ;;  %s34_s11 = int_to_ptr.hbm [resolvable:$true] %s33_s11 }
   0x3   :  { %17 = vsyncpa [#allocation4], 0  ;;  %s1514_s12 = smov [#allocation5]   ;;  %s63_s16 = sshll.u32 %s1607_s5, 4  ;;  %s64_s16 = int_to_ptr.hbm [resolvable:$true] %s63_s16 }
   0x4   :  { %s35_s13 = sshll.u32 %s1514_s12, 4  ;;  %s1515_s17 = smov 64   ;;  %s36_s13 = int_to_ptr.vmem [resolvable:$true] %s35_s13 }
   0x5   :  { %s1516_s18 = smov 4   ;;  %s1517_s19 = smov [#allocation8]  }
   0x6   :  { %41 = dma.hbm_to_vmem [thread:$0]  %s34_s11, 7168, %s36_s13, [#allocation6], %s1515_s17, %s1515_s17, %s1516_s18  }
   0x7   :  { %s65_s20 = sshll.u32 %s1517_s19, 4  ;;  %s23_s23 = sshll.u32 %s1602_s0, 4  ;;  %s66_s20 = int_to_ptr.vmem [resolvable:$true] %s65_s20  ;;  %s24_s23 = int_to_ptr.hbm [resolvable:$true] %s23_s23 }
   0x8   :  { %71 = dma.hbm_to_vmem [thread:$0]  %s64_s16, 1024, %s66_s20, [#allocation9], %s1515_s17, %s1515_s17, %s1516_s18  }
   0x9   :  { %s48_s25 = sshll.u32 %s1605_s3, 4  ;;  %s1518_s26 = smov [#allocation2]   ;;  %s49_s25 = int_to_ptr.hbm [resolvable:$true] %s48_s25 }
   0xa   :  { %s25_s27 = sshll.u32 %s1518_s26, 4  ;;  %s1519_s5 = smov [#allocation7]   ;;  %s26_s27 = int_to_ptr.vmem [resolvable:$true] %s25_s27 }
   0xb   :  { %28 = dma.hbm_to_vmem [thread:$0]  %s24_s23, 448, %s26_s27, [#allocation3]  }
   0xc   :  { %s50_s28 = sshll.u32 %s1519_s5, 4  ;;  %s78_s10 = sshll.u32 %s1609_s7, 4  ;;  %s51_s28 = int_to_ptr.vmem [resolvable:$true] %s50_s28  ;;  %s79_s10 = int_to_ptr.hbm [resolvable:$true] %s78_s10 }
   0xd   :  { %56 = dma.hbm_to_vmem [thread:$0]  %s49_s25, 1024, %s51_s28, [#allocation6], %s1515_s17, %s1515_s17, %s1516_s18  }
   0xe   :  { %s1520_s0 = smov [#allocation10]  }
   0xf   :  { %s80_s11 = sshll.u32 %s1520_s0, 4  ;;  %s81_s11 = int_to_ptr.vmem [resolvable:$true] %s80_s11 }
  0x10   :  { %86 = dma.hbm_to_vmem [thread:$0]  %s79_s10, 1024, %s81_s11, [#allocation9], %s1515_s17, %s1515_s17, %s1516_s18  }
  0x11   :  { %1506 = dma.done.wait [#allocation3], 448  }
  0x12   :  { %1507 = vsyncadd [#allocation3], 4294966848 }
  0x13   :  { %1508 = dma.done.wait [#allocation6], 8192  }
  0x14   :  { %1509 = vsyncadd [#allocation6], 4294959104 }
  0x15   :  { %1510 = dma.done.wait [#allocation9], 2048  }
  0x16   :  { %1511 = vsyncadd [#allocation9], 4294965248  ;;  %v1277_v0 = vld [vmem:[#allocation5 + $0x38] sm:$0xff]  ;;  %v1276_v3 = vld [vmem:[#allocation5 + $0x30] sm:$0xff]  ;;  %s1521_s16 = smov [#allocation11]   ;;  %s938_s20 = sshll.u32 %s1611_s9, 4  ;;  %s939_s20 = int_to_ptr.hbm [resolvable:$true] %s938_s20 }
  0x17   :  { %v1285_v1 = vld [vmem:[#allocation5 + $0x78] sm:$0xff]  ;;  %590 = vmatpush.bf16.msra.mxu0 %v1277_v0  ;;  %v1284_v4 = vld [vmem:[#allocation5 + $0x70] sm:$0xff]  ;;  %v1275_v7 = vld [vmem:[#allocation5 + $0x28] sm:$0xff]  ;;  %s936_s17 = sshll.u32 %s1521_s16, 4  ;;  %s937_s17 = int_to_ptr.vmem [resolvable:$true] %s936_s17 }
  0x18   :  { %v1293_v2 = vld [vmem:[#allocation5 + $0xb8] sm:$0xff]  ;;  %603 = vmatpush.bf16.msra.mxu1 %v1285_v1  ;;  %v1292_v5 = vld [vmem:[#allocation5 + $0xb0] sm:$0xff]  ;;  %v1283_v8 = vld [vmem:[#allocation5 + $0x68] sm:$0xff] }
  0x19   :  { %616 = vmatpush.bf16.msra.mxu2 %v1293_v2  ;;  %v1301_v6 = vld [vmem:[#allocation5 + $0xf8] sm:$0xff]  ;;  %v1291_v9 = vld [vmem:[#allocation5 + $0xa8] sm:$0xff]  ;;  %v1300_v10 = vld [vmem:[#allocation5 + $0xf0] sm:$0xff] }
  0x1a   :  { %629 = vmatpush.bf16.msra.mxu3 %v1301_v6  ;;  %v1274_v11 = vld [vmem:[#allocation5 + $0x20] sm:$0xff]  ;;  %v1299_v14 = vld [vmem:[#allocation5 + $0xe8] sm:$0xff]  ;;  %v1273_v15 = vld [vmem:[#allocation5 + $0x18] sm:$0xff] }
  0x1b   :  { %591 = vmatpush.bf16.msra.mxu0 %v1276_v3  ;;  %v1282_v12 = vld [vmem:[#allocation5 + $0x60] sm:$0xff]  ;;  %v1281_v16 = vld [vmem:[#allocation5 + $0x58] sm:$0xff]  ;;  %v1272_v19 = vld [vmem:[#allocation5 + $0x10] sm:$0xff] }
  0x1c   :  { %604 = vmatpush.bf16.msra.mxu1 %v1284_v4  ;;  %v1290_v13 = vld [vmem:[#allocation5 + $0xa0] sm:$0xff]  ;;  %v1289_v17 = vld [vmem:[#allocation5 + $0x98] sm:$0xff]  ;;  %v1280_v20 = vld [vmem:[#allocation5 + $0x50] sm:$0xff] }
  0x1d   :  { %617 = vmatpush.bf16.msra.mxu2 %v1292_v5  ;;  %v1298_v18 = vld [vmem:[#allocation5 + $0xe0] sm:$0xff]  ;;  %v1288_v21 = vld [vmem:[#allocation5 + $0x90] sm:$0xff]  ;;  %v1297_v22 = vld [vmem:[#allocation5 + $0xd8] sm:$0xff] }
  0x1e   :  { %630 = vmatpush.bf16.msra.mxu3 %v1300_v10  ;;  %v1271_v23 = vld [vmem:[#allocation5 + $0x8] sm:$0xff]  ;;  %v1296_v27 = vld [vmem:[#allocation5 + $0xd0] sm:$0xff]  ;;  %v1270_v30 = vld [vmem:[#allocation5] sm:$0xff] }
  0x1f   :  { %592 = vmatpush.bf16.msra.mxu0 %v1275_v7  ;;  %v1279_v24 = vld [vmem:[#allocation5 + $0x48] sm:$0xff]  ;;  %v1278_v31 = vld [vmem:[#allocation5 + $0x40] sm:$0xff]  ;;  %v1309_v35 = vld [vmem:[#allocation5 + $0x138] sm:$0xff] }
  0x20   :  { %605 = vmatpush.bf16.msra.mxu1 %v1283_v8  ;;  %v109_v25 = vld [vmem:[#allocation2] sm:$0xff]  ;;  %v110_v28 = vld [vmem:[#allocation2 + $0x8] sm:$0xff]  ;;  %v1317_v36 = vld [vmem:[#allocation5 + $0x178] sm:$0xff] }
  0x21   :  { %618 = vmatpush.bf16.msra.mxu2 %v1291_v9  ;;  %v1287_v26 = vld [vmem:[#allocation5 + $0x88] sm:$0xff]  ;;  %v233_v29 = vunpack.c.l.b16 %v109_v25  ;;  %v235_v32 = vunpack.c.l.b16 %v110_v28  ;;  %v234_v33 = vunpack.c.h.b16 %v109_v25  ;;  %v1286_v34 = vld [vmem:[#allocation5 + $0x80] sm:$0xff]  ;;  %v1325_v37 = vld [vmem:[#allocation5 + $0x1b8] sm:$0xff]  ;;  %v236_v46 = vunpack.c.h.b16 %v110_v28 }
  0x22   :  { %631 = vmatpush.bf16.msra.mxu3 %v1299_v14  ;;  %v1295_v39 = vld [vmem:[#allocation5 + $0xc8] sm:$0xff]  ;;  %v1308_v42 = vld [vmem:[#allocation5 + $0x130] sm:$0xff]  ;;  %v1294_v45 = vld [vmem:[#allocation5 + $0xc0] sm:$0xff] }
  0x23   :  { %593 = vmatpush.bf16.msra.mxu0 %v1274_v11  ;;  %v240_v38 = vpack.c.b16 %v233_v29, %v233_v29  ;;  %v242_v40 = vpack.c.b16 %v235_v32, %v235_v32  ;;  %v241_v41 = vpack.c.b16 %v234_v33, %v234_v33  ;;  %v1316_v43 = vld [vmem:[#allocation5 + $0x170] sm:$0xff]  ;;  %v1307_v47 = vld [vmem:[#allocation5 + $0x128] sm:$0xff]  ;;  %v243_v50 = vpack.c.b16 %v236_v46, %v236_v46  ;;  %v1306_v51 = vld [vmem:[#allocation5 + $0x120] sm:$0xff] }
  0x24   :  { %606 = vmatpush.bf16.msra.mxu1 %v1282_v12  ;;  %v1324_v44 = vld [vmem:[#allocation5 + $0x1b0] sm:$0xff]  ;;  %v1315_v48 = vld [vmem:[#allocation5 + $0x168] sm:$0xff]  ;;  %v1314_v52 = vld [vmem:[#allocation5 + $0x160] sm:$0xff] }
  0x25   :  { %619 = vmatpush.bf16.msra.mxu2 %v1290_v13  ;;  %v1323_v49 = vld [vmem:[#allocation5 + $0x1a8] sm:$0xff]  ;;  %v1322_v53 = vld [vmem:[#allocation5 + $0x1a0] sm:$0xff]  ;;  %v1305_v54 = vld [vmem:[#allocation5 + $0x118] sm:$0xff] }
  0x26   :  { %632 = vmatpush.bf16.msra.mxu3 %v1298_v18  ;;  %v1313_v55 = vld [vmem:[#allocation5 + $0x158] sm:$0xff]  ;;  %v1304_v57 = vld [vmem:[#allocation5 + $0x110] sm:$0xff]  ;;  %v1303_v60 = vld [vmem:[#allocation5 + $0x108] sm:$0xff] }
  0x27   :  { %594 = vmatpush.bf16.msra.mxu0 %v1273_v15  ;;  %v1321_v56 = vld [vmem:[#allocation5 + $0x198] sm:$0xff]  ;;  %v1312_v58 = vld [vmem:[#allocation5 + $0x150] sm:$0xff]  ;;  %v1311_v62 = vld [vmem:[#allocation5 + $0x148] sm:$0xff] }
  0x28   :  { %607 = vmatpush.bf16.msra.mxu1 %v1281_v16  ;;  %v1320_v59 = vld [vmem:[#allocation5 + $0x190] sm:$0xff]  ;;  %v1319_v63 = vld [vmem:[#allocation5 + $0x188] sm:$0xff]  ;;  %v112_v0 = vld [vmem:[#allocation2 + $0x18] sm:$0xf] }
  0x29   :  { %620 = vmatpush.bf16.msra.mxu2 %v1289_v17  ;;  %v111_v61 = vld [vmem:[#allocation2 + $0x10] sm:$0xff]  ;;  %v1302_v2 = vld [vmem:[#allocation5 + $0x100] sm:$0xff]  ;;  %v239_v4 = vunpack.c.l.b16 %v112_v0  ;;  %v1331_v12 = vld [vmem:[#allocation7 + $0x28] sm:$0xff] }
  0x2a   :  { %633 = vmatpush.bf16.msra.mxu3 %v1297_v22  ;;  %v237_v1 = vunpack.c.l.b16 %v111_v61  ;;  %v238_v3 = vunpack.c.h.b16 %v111_v61  ;;  %v1310_v5 = vld [vmem:[#allocation5 + $0x140] sm:$0xff]  ;;  %v1333_v10 = vld [vmem:[#allocation7 + $0x38] sm:$0xff]  ;;  %v1332_v11 = vld [vmem:[#allocation7 + $0x30] sm:$0xff] }
  0x2b   :  { %595 = vmatpush.bf16.msra.mxu0 %v1272_v19  ;;  %v1318_v6 = vld [vmem:[#allocation5 + $0x180] sm:$0xff]  ;;  %v246_v9 = vpack.c.b16 %v239_v4, %v239_v4  ;;  %v1329_v14 = vld [vmem:[#allocation7 + $0x18] sm:$0xff]  ;;  %v1328_v15 = vld [vmem:[#allocation7 + $0x10] sm:$0xff] }
  0x2c   :  { %608 = vmatpush.bf16.msra.mxu1 %v1280_v20  ;;  %v244_v7 = vpack.c.b16 %v237_v1, %v237_v1  ;;  %v245_v8 = vpack.c.b16 %v238_v3, %v238_v3  ;;  %v1330_v13 = vld [vmem:[#allocation7 + $0x20] sm:$0xff]  ;;  %v1327_v18 = vld [vmem:[#allocation7 + $0x8] sm:$0xff] }
  0x2d   :  { %621 = vmatpush.bf16.msra.mxu2 %v1288_v21  ;;  %v1326_v19 = vld [vmem:[#allocation7] sm:$0xff]  ;;  %v1339_v29 = vld [vmem:[#allocation8 + $0x28] sm:$0xff] }
  0x2e   :  { %634 = vmatpush.bf16.msra.mxu3 %v1296_v27  ;;  %v1338_v32 = vld [vmem:[#allocation8 + $0x20] sm:$0xff] }
  0x2f   :  { %596 = vmatpush.bf16.msra.mxu0 %v1271_v23  ;;  %v1341_v23 = vld [vmem:[#allocation8 + $0x38] sm:$0xff]  ;;  %v1360_v0 = vld [vmem:[%s1608_s6] ss:$0 sm:$0xff] }
  0x30   :  { %609 = vmatpush.bf16.msra.mxu1 %v1279_v24  ;;  %v1358_v24 = vld [vmem:[%s1604_s2] ss:$0 sm:$0xff] }
  0x31   :  { %622 = vmatpush.bf16.msra.mxu2 %v1287_v26  ;;  %v1340_v26 = vld [vmem:[#allocation8 + $0x30] sm:$0xff] }
  0x32   :  { %635 = vmatpush.bf16.msra.mxu3 %v1295_v39 }
  0x33   :  { %597 = vmatpush.bf16.msra.mxu0 %v1270_v30 }
  0x34   :  { %610 = vmatpush.bf16.msra.mxu1 %v1278_v31 }
  0x35   :  { %623 = vmatpush.bf16.msra.mxu2 %v1286_v34  ;;  %v1337_v34 = vld [vmem:[#allocation8 + $0x18] sm:$0xff] }
  0x36   :  { %598 = vmatmul.bf16.vlgmr.msra.gmra.mxu0 %v240_v38  ;;  %636 = vmatpush.bf16.msra.mxu3 %v1294_v45  ;;  %v1336_v38 = vld [vmem:[#allocation8 + $0x10] sm:$0xff] }
  0x37   :  { %642 = vmatpush.bf16.msrb.mxu0 %v1309_v35  ;;  %611 = vmatmul.bf16.vlgmr.msra.gmra.mxu1 %v241_v41 }
  0x38   :  { %655 = vmatpush.bf16.msrb.mxu1 %v1317_v36  ;;  %624 = vmatmul.bf16.vlgmr.msra.gmra.mxu2 %v242_v40 }
  0x39   :  { %668 = vmatpush.bf16.msrb.mxu2 %v1325_v37  ;;  %637 = vmatmul.bf16.vlgmr.msra.gmra.mxu3 %v243_v50  ;;  %v1349_v50 = vld [vmem:[#allocation10 + $0x38] sm:$0xff] }
  0x3a   :  { %751 = vmatpush.bf16.msrb.mxu3 %v1333_v10 }
  0x3b   :  { %643 = vmatpush.bf16.msrb.mxu0 %v1308_v42 }
  0x3c   :  { %656 = vmatpush.bf16.msrb.mxu1 %v1316_v43 }
  0x3d   :  { %669 = vmatpush.bf16.msrb.mxu2 %v1324_v44 }
  0x3e   :  { %752 = vmatpush.bf16.msrb.mxu3 %v1332_v11 }
  0x3f   :  { %644 = vmatpush.bf16.msrb.mxu0 %v1307_v47 }
  0x40   :  { %657 = vmatpush.bf16.msrb.mxu1 %v1315_v48  ;;  %v1335_v48 = vld [vmem:[#allocation8 + $0x8] sm:$0xff] }
  0x41   :  { %670 = vmatpush.bf16.msrb.mxu2 %v1323_v49  ;;  %v1334_v49 = vld [vmem:[#allocation8] sm:$0xff] }
  0x42   :  { %753 = vmatpush.bf16.msrb.mxu3 %v1331_v12 }
  0x43   :  { %645 = vmatpush.bf16.msrb.mxu0 %v1306_v51  ;;  %v1348_v51 = vld [vmem:[#allocation10 + $0x30] sm:$0xff] }
  0x44   :  { %658 = vmatpush.bf16.msrb.mxu1 %v1314_v52  ;;  %v1347_v52 = vld [vmem:[#allocation10 + $0x28] sm:$0xff] }
  0x45   :  { %671 = vmatpush.bf16.msrb.mxu2 %v1322_v53  ;;  %v1346_v53 = vld [vmem:[#allocation10 + $0x20] sm:$0xff] }
  0x46   :  { %754 = vmatpush.bf16.msrb.mxu3 %v1330_v13 }
  0x47   :  { %646 = vmatpush.bf16.msrb.mxu0 %v1305_v54  ;;  %v1345_v54 = vld [vmem:[#allocation10 + $0x18] sm:$0xff] }
  0x48   :  { %659 = vmatpush.bf16.msrb.mxu1 %v1313_v55  ;;  %v1344_v55 = vld [vmem:[#allocation10 + $0x10] sm:$0xff] }
  0x49   :  { %672 = vmatpush.bf16.msrb.mxu2 %v1321_v56  ;;  %v1359_v56 = vld [vmem:[%s1606_s4] ss:$0 sm:$0xff] }
  0x4a   :  { %755 = vmatpush.bf16.msrb.mxu3 %v1329_v14 }
  0x4b   :  { %647 = vmatpush.bf16.msrb.mxu0 %v1304_v57 }
  0x4c   :  { %660 = vmatpush.bf16.msrb.mxu1 %v1312_v58 }
  0x4d   :  { %673 = vmatpush.bf16.msrb.mxu2 %v1320_v59 }
  0x4e   :  { %756 = vmatpush.bf16.msrb.mxu3 %v1328_v15 }
  0x4f   :  { %648 = vmatpush.bf16.msrb.mxu0 %v1303_v60 }
  0x50   :  { %661 = vmatpush.bf16.msrb.mxu1 %v1311_v62  ;;  %v1343_v62 = vld [vmem:[#allocation10 + $0x8] sm:$0xff] }
  0x51   :  { %674 = vmatpush.bf16.msrb.mxu2 %v1319_v63  ;;  %v1342_v63 = vld [vmem:[#allocation10] sm:$0xff] }
  0x52   :  { %757 = vmatpush.bf16.msrb.mxu3 %v1327_v18 }
  0x53   :  { %649 = vmatpush.bf16.msrb.mxu0 %v1302_v2 }
  0x54   :  { %662 = vmatpush.bf16.msrb.mxu1 %v1310_v5 }
  0x55   :  { %675 = vmatpush.bf16.msrb.mxu2 %v1318_v6  ;;  %v1361_v6 = vld [vmem:[%s1610_s8] ss:$0 sm:$0xff] }
  0x56   :  { %650 = vmatmul.bf16.vlgmr.msrb.gmra.mxu0 %v244_v7  ;;  %758 = vmatpush.bf16.msrb.mxu3 %v1326_v19 }
  0x57   :  { %663 = vmatmul.bf16.vlgmr.msrb.gmra.mxu1 %v245_v8  ;;  %834 = vmatpush.bf16.msra.mxu0 %v1341_v23 }
  0x58   :  { %676 = vmatmul.bf16.vlgmr.msrb.gmra.mxu2 %v246_v9  ;;  %917 = vmatpush.bf16.msra.mxu1 %v1349_v50 }
  0x5b   :  { %835 = vmatpush.bf16.msra.mxu0 %v1340_v26 }
  0x5c   :  { %918 = vmatpush.bf16.msra.mxu1 %v1348_v51 }
  0x5f   :  { %836 = vmatpush.bf16.msra.mxu0 %v1339_v29 }
  0x60   :  { %919 = vmatpush.bf16.msra.mxu1 %v1347_v52 }
  0x63   :  { %837 = vmatpush.bf16.msra.mxu0 %v1338_v32 }
  0x64   :  { %920 = vmatpush.bf16.msra.mxu1 %v1346_v53 }
  0x67   :  { %838 = vmatpush.bf16.msra.mxu0 %v1337_v34 }
  0x68   :  { %921 = vmatpush.bf16.msra.mxu1 %v1345_v54 }
  0x6b   :  { %839 = vmatpush.bf16.msra.mxu0 %v1336_v38 }
  0x6c   :  { %922 = vmatpush.bf16.msra.mxu1 %v1344_v55 }
  0x6f   :  { %840 = vmatpush.bf16.msra.mxu0 %v1335_v48 }
  0x70   :  { %923 = vmatpush.bf16.msra.mxu1 %v1343_v62 }
  0x73   :  { %841 = vmatpush.bf16.msra.mxu0 %v1334_v49 }
  0x74   :  { %924 = vmatpush.bf16.msra.mxu1 %v1342_v63 }
  0xb3   :  { %v599_v16 = vpop.f32.mrf.mxu0 }
  0xb4   :  { %v612_v17 = vpop.f32.mrf.mxu1  ;;  %v600_v28 = vadd.f32 %v1358_v24, %v599_v16 }
  0xb6   :  { %v613_v30 = vadd.f32 %v612_v17, %v600_v28 }
  0xbb   :  { %v625_v20 = vpop.f32.mrf.mxu2  ;;  %v601_v21 = vpop.f32.mrf.mxu0 }
  0xbc   :  { %v614_v22 = vpop.f32.mrf.mxu1  ;;  %v638_v25 = vpop.f32.mrf.mxu3  ;;  %v626_v33 = vadd.f32 %v625_v20, %v613_v30 }
  0xbe   :  { %v639_v35 = vadd.f32 %v638_v25, %v626_v33 }
  0xc3   :  { %v627_v27 = vpop.f32.mrf.mxu2 }
  0xc4   :  { %v640_v31 = vpop.f32.mrf.mxu3 }
  0xd3   :  { %v651_v36 = vpop.f32.mrf.mxu0 }
  0xd4   :  { %v664_v37 = vpop.f32.mrf.mxu1  ;;  %v652_v39 = vadd.f32 %v651_v36, %v639_v35 }
  0xd6   :  { %v665_v40 = vadd.f32 %v664_v37, %v652_v39 }
  0xdb   :  { %v677_v41 = vpop.f32.mrf.mxu2  ;;  %v653_v43 = vpop.f32.mrf.mxu0 }
  0xdc   :  { %v678_v42 = vadd.f32 %v677_v41, %v665_v40  ;;  %v666_v44 = vpop.f32.mrf.mxu1 }
  0xde   :  { %v681_v45 = vmax.f32 %v678_v42, 0.0 }
  0xe0   :  { %v682_v46 = vpack.c.bf16 %v681_v45, %v681_v45 }
  0xe2   :  { %759 = vmatmul.bf16.vlgmr.msrb.gmra.mxu3 %v682_v46 }
  0xe3   :  { %v679_v47 = vpop.f32.mrf.mxu2 }
 0x165   :  { %v760_v57 = vpop.f32.mrf.mxu3 }
 0x166   :  { %v761_v58 = vadd.f32 %v1359_v56, %v760_v57 }
 0x168   :  { %v764_v59 = vmax.f32 %v761_v58, 0.0 }
 0x16a   :  { %v765_v60 = vpack.c.bf16 %v764_v59, %v764_v59 }
 0x16c   :  { %842 = vmatmul.bf16.vlgmr.msra.gmra.mxu0 %v765_v60 }
 0x16d   :  { %v762_v61 = vpop.f32.mrf.mxu3 }
 0x1e9   :  { %v843_v1 = vpop.f32.mrf.mxu0 }
 0x1ea   :  { %v844_v2 = vadd.f32 %v1360_v0, %v843_v1 }
 0x1ec   :  { %v847_v3 = vmax.f32 %v844_v2, 0.0 }
 0x1ee   :  { %v848_v4 = vpack.c.bf16 %v847_v3, %v847_v3 }
 0x1f0   :  { %925 = vmatmul.bf16.vlgmr.msra.gmra.mxu1 %v848_v4 }
 0x1f1   :  { %v845_v5 = vpop.f32.mrf.mxu0 }
 0x26d   :  { %v926_v7 = vpop.f32.mrf.mxu1 }
 0x26e   :  { %v927_v8 = vadd.f32 %v1361_v6, %v926_v7 }
 0x270   :  { %930 = vst [vmem:[#allocation11] sm:$0xff] %v927_v8 }
 0x271   :  { %941 = dma.vmem_to_hbm [thread:$0]  %s937_s17, 128, %s939_s20, [#allocation4]  }
 0x275   :  { %v928_v9 = vpop.f32.mrf.mxu1 }
 0x276   :  { %1512 = dma.done.wait [#allocation4], 128  }
 0x277   :  { %1513 = vsyncadd [#allocation4], 4294967168 }
 0x278   :  { %946 = vsyncpa [#allocation3], 1 }
 0x279   :  { %947 = vsyncpa [#allocation6], 1 }
 0x27a   :  { %948 = vsyncpa [#allocation9], 1 }
 0x27b   :  { %949 = vsyncpa [#allocation4], 1 }

</bundles_post_ra>
